<compile_context>
chip_gen: v6e
topology: v6e:2x2x1
jax: 0.10.0
libtpu: 0.0.40
codegen_flags: <defaults>
</compile_context>

<pallas_src>
import functools

import jax
import jax.numpy as jnp
import numpy as np
from jax.experimental import pallas as pl
from jax.experimental.pallas import tpu as pltpu


def _lstm_kernel(idx_ref, emb_proj_ref, b_in_ref, w_hh_ref,
                 h0_ref, c0_ref, fc_wf_ref, fc_wb_ref, fc_b_ref,
                 logits_ref, state_ref,
                 *, seq_len, hidden, batch, max_apps):
    f32 = jnp.float32
    H, B, T = hidden, batch, seq_len
    TB = T * B

    # ---- Embedding gather + input projection (+ bias) for every (t, b): ONE matmul.
    # emb_proj is the pre-projected table emb @ [W_in_fwd | W_in_bwd]  ([max_apps, 16H]).
    idx = idx_ref[...]                                           # [T*B, 1] int32 (time-major)
    lane = jax.lax.broadcasted_iota(jnp.int32, (TB, max_apps), 1)
    onehot = (idx == lane).astype(f32)                           # [T*B, max_apps]
    wx = jnp.dot(onehot, emb_proj_ref[...],
                 preferred_element_type=f32) + b_in_ref[...]     # [T*B, 16H]
    # cols [0:8H]  : fwd-direction gate-interleaved projection (bwd columns zero)
    # cols [8H:16H]: bwd-direction gate-interleaved projection (fwd columns zero)

    # ---- Weights / state loaded once, outside the recurrence.
    w_hh = w_hh_ref[...]                                         # [2H, 8H] block-diagonal
    h = h0_ref[...]                                              # [B, 2H] = [h_fwd | h_bwd]
    c = c0_ref[...]                                              # [B, 2H] = [c_fwd | c_bwd]

    # ---- Fused bidirectional recurrence (fwd consumes t = s, bwd consumes t = T-1-s).
    # TODO(synk): for long sequences switch this static unroll to lax.fori_loop with
    # the projections staged in a VMEM scratch; at T=8 the unroll is optimal.
    h_after_first = h
    for s in range(T):
        wx_step = (wx[s * B:(s + 1) * B, 0:8 * H]
                   + wx[(T - 1 - s) * B:(T - s) * B, 8 * H:16 * H])          # [B, 8H]
        gates = wx_step + jnp.dot(h, w_hh, preferred_element_type=f32)       # [B, 8H]
        sg = jax.nn.sigmoid(gates)                                           # one EUP pass
        th = jnp.tanh(gates)                                                 # one EUP pass
        i_g = sg[:, 0:2 * H]
        f_g = sg[:, 2 * H:4 * H]
        g_g = th[:, 4 * H:6 * H]
        o_g = sg[:, 6 * H:8 * H]
        c = f_g * c + i_g * g_g
        h = o_g * jnp.tanh(c)
        if s == 0:
            h_after_first = h          # bwd half (cols H:2H) = reverse hidden at t = T-1

    # ---- Final states, written as one lane-dense [B, 4H] slab: [h_fwd|h_bwd|c_fwd|c_bwd]
    state_ref[...] = jnp.concatenate([h, c], axis=-1)

    # ---- fc1 on concat(h_fwd@t=T-1, h_bwd@t=T-1): two matmuls against
    # row-zero-padded fc weights (no sub-lane slicing of h needed). Output is
    # padded to 128 lanes for an unmasked store; wrapper slices it back.
    logits_ref[...] = (jnp.dot(h, fc_wf_ref[...], preferred_element_type=f32)
                       + jnp.dot(h_after_first, fc_wb_ref[...],
                                 preferred_element_type=f32)
                       + fc_b_ref[...])


def lstm_forward(idx, emb, w_ih_f, w_hh_f, b_f, w_ih_b, w_hh_b, b_b,
                 h0, c0, fc_w, fc_b):
    B, T = idx.shape
    max_apps = emb.shape[0]
    H = w_hh_f.shape[0]
    NPAD = max(128, ((max_apps + 127) // 128) * 128)

    def interleave(wf, wb):
        # [d, 4H] (i,f,g,o) x2  ->  [d, 8H] with columns [i_f,i_b,f_f,f_b,g_f,g_b,o_f,o_b]
        d = wf.shape[0]
        return jnp.stack([wf.reshape(d, 4, H), wb.reshape(d, 4, H)],
                         axis=2).reshape(d, 8 * H)

    # Input projection folded into the embedding table (cuDNN-style hoist).
    zi = jnp.zeros_like(w_ih_f)
    w_in = jnp.concatenate([interleave(w_ih_f, zi), interleave(zi, w_ih_b)],
                           axis=1)                              # [src_dim, 16H]
    emb_proj = emb @ w_in                                       # [max_apps, 16H]
    zb = jnp.zeros_like(b_f)
    b_in = jnp.concatenate([interleave(b_f, zb), interleave(zb, b_b)],
                           axis=1)                              # [1, 16H]

    # Block-diagonal fused recurrent weight.
    zh = jnp.zeros_like(w_hh_f)
    w_hh_packed = jnp.concatenate([interleave(w_hh_f, zh),
                                   interleave(zh, w_hh_b)], axis=0)   # [2H, 8H]

    # Packed initial state [h_fwd | h_bwd].
    h0_packed = jnp.concatenate([h0[0], h0[1]], axis=-1)        # [B, 2H]
    c0_packed = jnp.concatenate([c0[0], c0[1]], axis=-1)

    # fc weights: pad vocab dim to 128 lanes; split by direction via row zero-padding.
    pad = NPAD - max_apps
    fc_w_pad = jnp.pad(fc_w, ((0, 0), (0, pad)))                # [2H, NPAD]
    fc_b_pad = jnp.pad(fc_b, ((0, 0), (0, pad)))                # [1, NPAD]
    zrow = jnp.zeros((H, NPAD), fc_w.dtype)
    fc_wf = jnp.concatenate([fc_w_pad[:H], zrow], axis=0)       # uses h_fwd half only
    fc_wb = jnp.concatenate([zrow, fc_w_pad[H:]], axis=0)       # uses h_bwd half only

    # Time-major flattened indices: row t*B + b.
    idx_flat = idx.T.reshape(T * B, 1).astype(jnp.int32)

    kernel = functools.partial(_lstm_kernel, seq_len=T, hidden=H, batch=B,
                               max_apps=max_apps)
    vmem = pl.BlockSpec(memory_space=pltpu.MemorySpace.VMEM)
    out_shapes = (
        jax.ShapeDtypeStruct((B, NPAD), jnp.float32),           # padded logits
        jax.ShapeDtypeStruct((B, 4 * H), jnp.float32),          # [hn_packed | cn_packed]
    )
    logits_pad, state = pl.pallas_call(
        kernel,
        out_shape=out_shapes,
        in_specs=[vmem] * 9,
        out_specs=(vmem, vmem),
    )(idx_flat, emb_proj, b_in, w_hh_packed, h0_packed, c0_packed,
      fc_wf, fc_wb, fc_b_pad)

    logits = logits_pad[:, :max_apps]
    hn_p, cn_p = state[:, :2 * H], state[:, 2 * H:]
    hn = jnp.stack([hn_p[:, :H], hn_p[:, H:]], axis=0)          # [2, B, H]
    cn = jnp.stack([cn_p[:, :H], cn_p[:, H:]], axis=0)
    return logits, hn, cn


def ref_forward(idx, emb, w_ih_f, w_hh_f, b_f, w_ih_b, w_hh_b, b_b,
                h0, c0, fc_w, fc_b):
    """Pure-JAX reference mirroring PyTorch LSTM semantics."""
    B, T = idx.shape
    x = emb[idx]                                                # [B, T, src_dim]

    def cell(x_t, h, c, w_ih, w_hh, b):
        gates = x_t @ w_ih + h @ w_hh + b
        i, f, g, o = jnp.split(gates, 4, axis=-1)
        i, f, g, o = jax.nn.sigmoid(i), jax.nn.sigmoid(f), jnp.tanh(g), jax.nn.sigmoid(o)
        c = f * c + i * g
        return o * jnp.tanh(c), c

    h, c = h0[0], c0[0]
    for t in range(T):
        h, c = cell(x[:, t], h, c, w_ih_f, w_hh_f, b_f)
    h_fwd_last, hn0, cn0 = h, h, c

    h, c = h0[1], c0[1]
    h_bwd_last = None
    for s in range(T):
        t = T - 1 - s
        h, c = cell(x[:, t], h, c, w_ih_b, w_hh_b, b_b)
        if s == 0:
            h_bwd_last = h
    hn1, cn1 = h, c

    logits = jnp.concatenate([h_fwd_last, h_bwd_last], axis=-1) @ fc_w + fc_b
    return logits, jnp.stack([hn0, hn1]), jnp.stack([cn0, cn1])


if __name__ == "__main__":
    max_apps = 16      # vocabulary size / output classes
    n_lstm = 32        # hidden size
    src_dim = 4        # embedding dim
    B, T = 2, 8        # batch, sequence length
    H = n_lstm

    key = jax.random.PRNGKey(0)
    ks = jax.random.split(key, 10)
    k_lstm = 1.0 / float(np.sqrt(H))
    k_fc = 1.0 / float(np.sqrt(2 * H))

    emb = jax.random.normal(ks[0], (max_apps, src_dim), jnp.float32)
    w_ih_f = jax.random.uniform(ks[1], (src_dim, 4 * H), jnp.float32, -k_lstm, k_lstm)
    w_hh_f = jax.random.uniform(ks[2], (H, 4 * H), jnp.float32, -k_lstm, k_lstm)
    b_f = jax.random.uniform(ks[3], (1, 4 * H), jnp.float32, -k_lstm, k_lstm)
    w_ih_b = jax.random.uniform(ks[4], (src_dim, 4 * H), jnp.float32, -k_lstm, k_lstm)
    w_hh_b = jax.random.uniform(ks[5], (H, 4 * H), jnp.float32, -k_lstm, k_lstm)
    b_b = jax.random.uniform(ks[6], (1, 4 * H), jnp.float32, -k_lstm, k_lstm)
    fc_w = jax.random.uniform(ks[7], (2 * H, max_apps), jnp.float32, -k_fc, k_fc)
    fc_b = jax.random.uniform(ks[8], (1, max_apps), jnp.float32, -k_fc, k_fc)

    idx = jax.random.randint(ks[9], (B, T), 0, max_apps, jnp.int32)
    h0 = jnp.zeros((2, B, H), jnp.float32)     # init_hidden(batch_size)
    c0 = jnp.zeros((2, B, H), jnp.float32)

    args = (idx, emb, w_ih_f, w_hh_f, b_f, w_ih_b, w_hh_b, b_b, h0, c0, fc_w, fc_b)

    logits, hn, cn = lstm_forward(*args)
    jax.block_until_ready((logits, hn, cn))

    logits_ref, hn_ref_, cn_ref_ = ref_forward(*args)
    np.testing.assert_allclose(np.asarray(logits), np.asarray(logits_ref),
                               rtol=1e-5, atol=1e-5)
    np.testing.assert_allclose(np.asarray(hn), np.asarray(hn_ref_),
                               rtol=1e-5, atol=1e-5)
    np.testing.assert_allclose(np.asarray(cn), np.asarray(cn_ref_),
                               rtol=1e-5, atol=1e-5)

    print("KERNEL_OK")
</pallas_src>

<mosaic_0001>
module attributes {stable_mosaic.version = 11 : i64} {
  func.func @_lstm_kernel(%arg0: memref<16x1xi32, #tpu.memory_space<vmem>>, %arg1: memref<16x512xf32, #tpu.memory_space<vmem>>, %arg2: memref<1x512xf32, #tpu.memory_space<vmem>>, %arg3: memref<64x256xf32, #tpu.memory_space<vmem>>, %arg4: memref<2x64xf32, #tpu.memory_space<vmem>>, %arg5: memref<2x64xf32, #tpu.memory_space<vmem>>, %arg6: memref<64x128xf32, #tpu.memory_space<vmem>>, %arg7: memref<64x128xf32, #tpu.memory_space<vmem>>, %arg8: memref<1x128xf32, #tpu.memory_space<vmem>>, %arg9: memref<2x128xf32, #tpu.memory_space<vmem>>, %arg10: memref<2x128xf32, #tpu.memory_space<vmem>>) attributes {dimension_semantics = [], scalar_prefetch = 0 : i64, scratch_operands = 0 : i64, tpu.core_type = #tpu.core_type<tc>} {
    %c0 = arith.constant 0 : index
    %c0_0 = arith.constant 0 : index
    %0 = vector.load %arg0[%c0, %c0_0] : memref<16x1xi32, #tpu.memory_space<vmem>>, vector<16x1xi32>
    %1 = tpu.iota {dimensions = array<i32: 1>} : vector<16x16xi32>
    %2 = vector.broadcast %0 : vector<16x1xi32> to vector<16x16xi32>
    %3 = arith.cmpi eq, %2, %1 : vector<16x16xi32>
    %4 = arith.extui %3 : vector<16x16xi1> to vector<16x16xi32>
    %5 = arith.sitofp %4 : vector<16x16xi32> to vector<16x16xf32>
    %c0_1 = arith.constant 0 : index
    %c0_2 = arith.constant 0 : index
    %6 = vector.load %arg1[%c0_1, %c0_2] : memref<16x512xf32, #tpu.memory_space<vmem>>, vector<16x512xf32>
    %cst = arith.constant dense<0.000000e+00> : vector<16x512xf32>
    %7 = tpu.matmul %5, %6, %cst {dimension_numbers = #tpu.dot_dimension_numbers<[1], [0], [0], [1], [0, 0, 1, 1], [], []>} : vector<16x16xf32>, vector<16x512xf32>, vector<16x512xf32> -> vector<16x512xf32>
    %c0_3 = arith.constant 0 : index
    %c0_4 = arith.constant 0 : index
    %8 = vector.load %arg2[%c0_3, %c0_4] : memref<1x512xf32, #tpu.memory_space<vmem>>, vector<1x512xf32>
    %9 = vector.broadcast %8 : vector<1x512xf32> to vector<16x512xf32>
    %10 = arith.addf %7, %9 : vector<16x512xf32>
    %c0_5 = arith.constant 0 : index
    %c0_6 = arith.constant 0 : index
    %11 = vector.load %arg3[%c0_5, %c0_6] : memref<64x256xf32, #tpu.memory_space<vmem>>, vector<64x256xf32>
    %c0_7 = arith.constant 0 : index
    %c0_8 = arith.constant 0 : index
    %12 = vector.load %arg4[%c0_7, %c0_8] : memref<2x64xf32, #tpu.memory_space<vmem>>, vector<2x64xf32>
    %c0_9 = arith.constant 0 : index
    %c0_10 = arith.constant 0 : index
    %13 = vector.load %arg5[%c0_9, %c0_10] : memref<2x64xf32, #tpu.memory_space<vmem>>, vector<2x64xf32>
    %14 = vector.extract_strided_slice %10 {offsets = [0, 0], sizes = [2, 256], strides = [1, 1]} : vector<16x512xf32> to vector<2x256xf32>
    %15 = vector.extract_strided_slice %10 {offsets = [14, 256], sizes = [2, 256], strides = [1, 1]} : vector<16x512xf32> to vector<2x256xf32>
    %16 = arith.addf %14, %15 : vector<2x256xf32>
    %cst_11 = arith.constant dense<0.000000e+00> : vector<2x256xf32>
    %17 = tpu.matmul %12, %11, %cst_11 {dimension_numbers = #tpu.dot_dimension_numbers<[1], [0], [0], [1], [0, 0, 1, 1], [], []>} : vector<2x64xf32>, vector<64x256xf32>, vector<2x256xf32> -> vector<2x256xf32>
    %18 = arith.addf %16, %17 : vector<2x256xf32>
    %19 = arith.negf %18 : vector<2x256xf32>
    %20 = math.exp %19 : vector<2x256xf32>
    %cst_12 = arith.constant 1.000000e+00 : f32
    %21 = vector.broadcast %cst_12 : f32 to vector<2x256xf32>
    %22 = arith.addf %21, %20 : vector<2x256xf32>
    %23 = arith.divf %21, %22 : vector<2x256xf32>
    %24 = math.tanh %18 : vector<2x256xf32>
    %25 = vector.extract_strided_slice %23 {offsets = [0, 0], sizes = [2, 64], strides = [1, 1]} : vector<2x256xf32> to vector<2x64xf32>
    %26 = vector.extract_strided_slice %23 {offsets = [0, 64], sizes = [2, 64], strides = [1, 1]} : vector<2x256xf32> to vector<2x64xf32>
    %27 = vector.extract_strided_slice %24 {offsets = [0, 128], sizes = [2, 64], strides = [1, 1]} : vector<2x256xf32> to vector<2x64xf32>
    %28 = vector.extract_strided_slice %23 {offsets = [0, 192], sizes = [2, 64], strides = [1, 1]} : vector<2x256xf32> to vector<2x64xf32>
    %29 = arith.mulf %26, %13 : vector<2x64xf32>
    %30 = arith.mulf %25, %27 : vector<2x64xf32>
    %31 = arith.addf %29, %30 : vector<2x64xf32>
    %32 = math.tanh %31 : vector<2x64xf32>
    %33 = arith.mulf %28, %32 : vector<2x64xf32>
    %34 = vector.extract_strided_slice %10 {offsets = [2, 0], sizes = [2, 256], strides = [1, 1]} : vector<16x512xf32> to vector<2x256xf32>
    %35 = vector.extract_strided_slice %10 {offsets = [12, 256], sizes = [2, 256], strides = [1, 1]} : vector<16x512xf32> to vector<2x256xf32>
    %36 = arith.addf %34, %35 : vector<2x256xf32>
    %cst_13 = arith.constant dense<0.000000e+00> : vector<2x256xf32>
    %37 = tpu.matmul %33, %11, %cst_13 {dimension_numbers = #tpu.dot_dimension_numbers<[1], [0], [0], [1], [0, 0, 1, 1], [], []>} : vector<2x64xf32>, vector<64x256xf32>, vector<2x256xf32> -> vector<2x256xf32>
    %38 = arith.addf %36, %37 : vector<2x256xf32>
    %39 = arith.negf %38 : vector<2x256xf32>
    %40 = math.exp %39 : vector<2x256xf32>
    %cst_14 = arith.constant 1.000000e+00 : f32
    %41 = vector.broadcast %cst_14 : f32 to vector<2x256xf32>
    %42 = arith.addf %41, %40 : vector<2x256xf32>
    %43 = arith.divf %41, %42 : vector<2x256xf32>
    %44 = math.tanh %38 : vector<2x256xf32>
    %45 = vector.extract_strided_slice %43 {offsets = [0, 0], sizes = [2, 64], strides = [1, 1]} : vector<2x256xf32> to vector<2x64xf32>
    %46 = vector.extract_strided_slice %43 {offsets = [0, 64], sizes = [2, 64], strides = [1, 1]} : vector<2x256xf32> to vector<2x64xf32>
    %47 = vector.extract_strided_slice %44 {offsets = [0, 128], sizes = [2, 64], strides = [1, 1]} : vector<2x256xf32> to vector<2x64xf32>
    %48 = vector.extract_strided_slice %43 {offsets = [0, 192], sizes = [2, 64], strides = [1, 1]} : vector<2x256xf32> to vector<2x64xf32>
    %49 = arith.mulf %46, %31 : vector<2x64xf32>
    %50 = arith.mulf %45, %47 : vector<2x64xf32>
    %51 = arith.addf %49, %50 : vector<2x64xf32>
    %52 = math.tanh %51 : vector<2x64xf32>
    %53 = arith.mulf %48, %52 : vector<2x64xf32>
    %54 = vector.extract_strided_slice %10 {offsets = [4, 0], sizes = [2, 256], strides = [1, 1]} : vector<16x512xf32> to vector<2x256xf32>
    %55 = vector.extract_strided_slice %10 {offsets = [10, 256], sizes = [2, 256], strides = [1, 1]} : vector<16x512xf32> to vector<2x256xf32>
    %56 = arith.addf %54, %55 : vector<2x256xf32>
    %cst_15 = arith.constant dense<0.000000e+00> : vector<2x256xf32>
    %57 = tpu.matmul %53, %11, %cst_15 {dimension_numbers = #tpu.dot_dimension_numbers<[1], [0], [0], [1], [0, 0, 1, 1], [], []>} : vector<2x64xf32>, vector<64x256xf32>, vector<2x256xf32> -> vector<2x256xf32>
    %58 = arith.addf %56, %57 : vector<2x256xf32>
    %59 = arith.negf %58 : vector<2x256xf32>
    %60 = math.exp %59 : vector<2x256xf32>
    %cst_16 = arith.constant 1.000000e+00 : f32
    %61 = vector.broadcast %cst_16 : f32 to vector<2x256xf32>
    %62 = arith.addf %61, %60 : vector<2x256xf32>
    %63 = arith.divf %61, %62 : vector<2x256xf32>
    %64 = math.tanh %58 : vector<2x256xf32>
    %65 = vector.extract_strided_slice %63 {offsets = [0, 0], sizes = [2, 64], strides = [1, 1]} : vector<2x256xf32> to vector<2x64xf32>
    %66 = vector.extract_strided_slice %63 {offsets = [0, 64], sizes = [2, 64], strides = [1, 1]} : vector<2x256xf32> to vector<2x64xf32>
    %67 = vector.extract_strided_slice %64 {offsets = [0, 128], sizes = [2, 64], strides = [1, 1]} : vector<2x256xf32> to vector<2x64xf32>
    %68 = vector.extract_strided_slice %63 {offsets = [0, 192], sizes = [2, 64], strides = [1, 1]} : vector<2x256xf32> to vector<2x64xf32>
    %69 = arith.mulf %66, %51 : vector<2x64xf32>
    %70 = arith.mulf %65, %67 : vector<2x64xf32>
    %71 = arith.addf %69, %70 : vector<2x64xf32>
    %72 = math.tanh %71 : vector<2x64xf32>
    %73 = arith.mulf %68, %72 : vector<2x64xf32>
    %74 = vector.extract_strided_slice %10 {offsets = [6, 0], sizes = [2, 256], strides = [1, 1]} : vector<16x512xf32> to vector<2x256xf32>
    %75 = vector.extract_strided_slice %10 {offsets = [8, 256], sizes = [2, 256], strides = [1, 1]} : vector<16x512xf32> to vector<2x256xf32>
    %76 = arith.addf %74, %75 : vector<2x256xf32>
    %cst_17 = arith.constant dense<0.000000e+00> : vector<2x256xf32>
    %77 = tpu.matmul %73, %11, %cst_17 {dimension_numbers = #tpu.dot_dimension_numbers<[1], [0], [0], [1], [0, 0, 1, 1], [], []>} : vector<2x64xf32>, vector<64x256xf32>, vector<2x256xf32> -> vector<2x256xf32>
    %78 = arith.addf %76, %77 : vector<2x256xf32>
    %79 = arith.negf %78 : vector<2x256xf32>
    %80 = math.exp %79 : vector<2x256xf32>
    %cst_18 = arith.constant 1.000000e+00 : f32
    %81 = vector.broadcast %cst_18 : f32 to vector<2x256xf32>
    %82 = arith.addf %81, %80 : vector<2x256xf32>
    %83 = arith.divf %81, %82 : vector<2x256xf32>
    %84 = math.tanh %78 : vector<2x256xf32>
    %85 = vector.extract_strided_slice %83 {offsets = [0, 0], sizes = [2, 64], strides = [1, 1]} : vector<2x256xf32> to vector<2x64xf32>
    %86 = vector.extract_strided_slice %83 {offsets = [0, 64], sizes = [2, 64], strides = [1, 1]} : vector<2x256xf32> to vector<2x64xf32>
    %87 = vector.extract_strided_slice %84 {offsets = [0, 128], sizes = [2, 64], strides = [1, 1]} : vector<2x256xf32> to vector<2x64xf32>
    %88 = vector.extract_strided_slice %83 {offsets = [0, 192], sizes = [2, 64], strides = [1, 1]} : vector<2x256xf32> to vector<2x64xf32>
    %89 = arith.mulf %86, %71 : vector<2x64xf32>
    %90 = arith.mulf %85, %87 : vector<2x64xf32>
    %91 = arith.addf %89, %90 : vector<2x64xf32>
    %92 = math.tanh %91 : vector<2x64xf32>
    %93 = arith.mulf %88, %92 : vector<2x64xf32>
    %94 = vector.extract_strided_slice %10 {offsets = [8, 0], sizes = [2, 256], strides = [1, 1]} : vector<16x512xf32> to vector<2x256xf32>
    %95 = vector.extract_strided_slice %10 {offsets = [6, 256], sizes = [2, 256], strides = [1, 1]} : vector<16x512xf32> to vector<2x256xf32>
    %96 = arith.addf %94, %95 : vector<2x256xf32>
    %cst_19 = arith.constant dense<0.000000e+00> : vector<2x256xf32>
    %97 = tpu.matmul %93, %11, %cst_19 {dimension_numbers = #tpu.dot_dimension_numbers<[1], [0], [0], [1], [0, 0, 1, 1], [], []>} : vector<2x64xf32>, vector<64x256xf32>, vector<2x256xf32> -> vector<2x256xf32>
    %98 = arith.addf %96, %97 : vector<2x256xf32>
    %99 = arith.negf %98 : vector<2x256xf32>
    %100 = math.exp %99 : vector<2x256xf32>
    %cst_20 = arith.constant 1.000000e+00 : f32
    %101 = vector.broadcast %cst_20 : f32 to vector<2x256xf32>
    %102 = arith.addf %101, %100 : vector<2x256xf32>
    %103 = arith.divf %101, %102 : vector<2x256xf32>
    %104 = math.tanh %98 : vector<2x256xf32>
    %105 = vector.extract_strided_slice %103 {offsets = [0, 0], sizes = [2, 64], strides = [1, 1]} : vector<2x256xf32> to vector<2x64xf32>
    %106 = vector.extract_strided_slice %103 {offsets = [0, 64], sizes = [2, 64], strides = [1, 1]} : vector<2x256xf32> to vector<2x64xf32>
    %107 = vector.extract_strided_slice %104 {offsets = [0, 128], sizes = [2, 64], strides = [1, 1]} : vector<2x256xf32> to vector<2x64xf32>
    %108 = vector.extract_strided_slice %103 {offsets = [0, 192], sizes = [2, 64], strides = [1, 1]} : vector<2x256xf32> to vector<2x64xf32>
    %109 = arith.mulf %106, %91 : vector<2x64xf32>
    %110 = arith.mulf %105, %107 : vector<2x64xf32>
    %111 = arith.addf %109, %110 : vector<2x64xf32>
    %112 = math.tanh %111 : vector<2x64xf32>
    %113 = arith.mulf %108, %112 : vector<2x64xf32>
    %114 = vector.extract_strided_slice %10 {offsets = [10, 0], sizes = [2, 256], strides = [1, 1]} : vector<16x512xf32> to vector<2x256xf32>
    %115 = vector.extract_strided_slice %10 {offsets = [4, 256], sizes = [2, 256], strides = [1, 1]} : vector<16x512xf32> to vector<2x256xf32>
    %116 = arith.addf %114, %115 : vector<2x256xf32>
    %cst_21 = arith.constant dense<0.000000e+00> : vector<2x256xf32>
    %117 = tpu.matmul %113, %11, %cst_21 {dimension_numbers = #tpu.dot_dimension_numbers<[1], [0], [0], [1], [0, 0, 1, 1], [], []>} : vector<2x64xf32>, vector<64x256xf32>, vector<2x256xf32> -> vector<2x256xf32>
    %118 = arith.addf %116, %117 : vector<2x256xf32>
    %119 = arith.negf %118 : vector<2x256xf32>
    %120 = math.exp %119 : vector<2x256xf32>
    %cst_22 = arith.constant 1.000000e+00 : f32
    %121 = vector.broadcast %cst_22 : f32 to vector<2x256xf32>
    %122 = arith.addf %121, %120 : vector<2x256xf32>
    %123 = arith.divf %121, %122 : vector<2x256xf32>
    %124 = math.tanh %118 : vector<2x256xf32>
    %125 = vector.extract_strided_slice %123 {offsets = [0, 0], sizes = [2, 64], strides = [1, 1]} : vector<2x256xf32> to vector<2x64xf32>
    %126 = vector.extract_strided_slice %123 {offsets = [0, 64], sizes = [2, 64], strides = [1, 1]} : vector<2x256xf32> to vector<2x64xf32>
    %127 = vector.extract_strided_slice %124 {offsets = [0, 128], sizes = [2, 64], strides = [1, 1]} : vector<2x256xf32> to vector<2x64xf32>
    %128 = vector.extract_strided_slice %123 {offsets = [0, 192], sizes = [2, 64], strides = [1, 1]} : vector<2x256xf32> to vector<2x64xf32>
    %129 = arith.mulf %126, %111 : vector<2x64xf32>
    %130 = arith.mulf %125, %127 : vector<2x64xf32>
    %131 = arith.addf %129, %130 : vector<2x64xf32>
    %132 = math.tanh %131 : vector<2x64xf32>
    %133 = arith.mulf %128, %132 : vector<2x64xf32>
    %134 = vector.extract_strided_slice %10 {offsets = [12, 0], sizes = [2, 256], strides = [1, 1]} : vector<16x512xf32> to vector<2x256xf32>
    %135 = vector.extract_strided_slice %10 {offsets = [2, 256], sizes = [2, 256], strides = [1, 1]} : vector<16x512xf32> to vector<2x256xf32>
    %136 = arith.addf %134, %135 : vector<2x256xf32>
    %cst_23 = arith.constant dense<0.000000e+00> : vector<2x256xf32>
    %137 = tpu.matmul %133, %11, %cst_23 {dimension_numbers = #tpu.dot_dimension_numbers<[1], [0], [0], [1], [0, 0, 1, 1], [], []>} : vector<2x64xf32>, vector<64x256xf32>, vector<2x256xf32> -> vector<2x256xf32>
    %138 = arith.addf %136, %137 : vector<2x256xf32>
    %139 = arith.negf %138 : vector<2x256xf32>
    %140 = math.exp %139 : vector<2x256xf32>
    %cst_24 = arith.constant 1.000000e+00 : f32
    %141 = vector.broadcast %cst_24 : f32 to vector<2x256xf32>
    %142 = arith.addf %141, %140 : vector<2x256xf32>
    %143 = arith.divf %141, %142 : vector<2x256xf32>
    %144 = math.tanh %138 : vector<2x256xf32>
    %145 = vector.extract_strided_slice %143 {offsets = [0, 0], sizes = [2, 64], strides = [1, 1]} : vector<2x256xf32> to vector<2x64xf32>
    %146 = vector.extract_strided_slice %143 {offsets = [0, 64], sizes = [2, 64], strides = [1, 1]} : vector<2x256xf32> to vector<2x64xf32>
    %147 = vector.extract_strided_slice %144 {offsets = [0, 128], sizes = [2, 64], strides = [1, 1]} : vector<2x256xf32> to vector<2x64xf32>
    %148 = vector.extract_strided_slice %143 {offsets = [0, 192], sizes = [2, 64], strides = [1, 1]} : vector<2x256xf32> to vector<2x64xf32>
    %149 = arith.mulf %146, %131 : vector<2x64xf32>
    %150 = arith.mulf %145, %147 : vector<2x64xf32>
    %151 = arith.addf %149, %150 : vector<2x64xf32>
    %152 = math.tanh %151 : vector<2x64xf32>
    %153 = arith.mulf %148, %152 : vector<2x64xf32>
    %154 = vector.extract_strided_slice %10 {offsets = [14, 0], sizes = [2, 256], strides = [1, 1]} : vector<16x512xf32> to vector<2x256xf32>
    %155 = vector.extract_strided_slice %10 {offsets = [0, 256], sizes = [2, 256], strides = [1, 1]} : vector<16x512xf32> to vector<2x256xf32>
    %156 = arith.addf %154, %155 : vector<2x256xf32>
    %cst_25 = arith.constant dense<0.000000e+00> : vector<2x256xf32>
    %157 = tpu.matmul %153, %11, %cst_25 {dimension_numbers = #tpu.dot_dimension_numbers<[1], [0], [0], [1], [0, 0, 1, 1], [], []>} : vector<2x64xf32>, vector<64x256xf32>, vector<2x256xf32> -> vector<2x256xf32>
    %158 = arith.addf %156, %157 : vector<2x256xf32>
    %159 = arith.negf %158 : vector<2x256xf32>
    %160 = math.exp %159 : vector<2x256xf32>
    %cst_26 = arith.constant 1.000000e+00 : f32
    %161 = vector.broadcast %cst_26 : f32 to vector<2x256xf32>
    %162 = arith.addf %161, %160 : vector<2x256xf32>
    %163 = arith.divf %161, %162 : vector<2x256xf32>
    %164 = math.tanh %158 : vector<2x256xf32>
    %165 = vector.extract_strided_slice %163 {offsets = [0, 0], sizes = [2, 64], strides = [1, 1]} : vector<2x256xf32> to vector<2x64xf32>
    %166 = vector.extract_strided_slice %163 {offsets = [0, 64], sizes = [2, 64], strides = [1, 1]} : vector<2x256xf32> to vector<2x64xf32>
    %167 = vector.extract_strided_slice %164 {offsets = [0, 128], sizes = [2, 64], strides = [1, 1]} : vector<2x256xf32> to vector<2x64xf32>
    %168 = vector.extract_strided_slice %163 {offsets = [0, 192], sizes = [2, 64], strides = [1, 1]} : vector<2x256xf32> to vector<2x64xf32>
    %169 = arith.mulf %166, %151 : vector<2x64xf32>
    %170 = arith.mulf %165, %167 : vector<2x64xf32>
    %171 = arith.addf %169, %170 : vector<2x64xf32>
    %172 = math.tanh %171 : vector<2x64xf32>
    %173 = arith.mulf %168, %172 : vector<2x64xf32>
    %174 = tpu.concatenate %173, %171 in 1 : vector<2x64xf32>, vector<2x64xf32> -> vector<2x128xf32>
    %c0_27 = arith.constant 0 : index
    %c0_28 = arith.constant 0 : index
    %175 = vector.load %arg10[%c0_27, %c0_28] : memref<2x128xf32, #tpu.memory_space<vmem>>, vector<2x128xf32>
    tpu.vector_store %arg10[%c0_27, %c0_28], %174 {strides = array<i32>} : memref<2x128xf32, #tpu.memory_space<vmem>>, vector<2x128xf32>,
    %c0_29 = arith.constant 0 : index
    %c0_30 = arith.constant 0 : index
    %176 = vector.load %arg6[%c0_29, %c0_30] : memref<64x128xf32, #tpu.memory_space<vmem>>, vector<64x128xf32>
    %cst_31 = arith.constant dense<0.000000e+00> : vector<2x128xf32>
    %177 = tpu.matmul %173, %176, %cst_31 {dimension_numbers = #tpu.dot_dimension_numbers<[1], [0], [0], [1], [0, 0, 1, 1], [], []>} : vector<2x64xf32>, vector<64x128xf32>, vector<2x128xf32> -> vector<2x128xf32>
    %c0_32 = arith.constant 0 : index
    %c0_33 = arith.constant 0 : index
    %178 = vector.load %arg7[%c0_32, %c0_33] : memref<64x128xf32, #tpu.memory_space<vmem>>, vector<64x128xf32>
    %cst_34 = arith.constant dense<0.000000e+00> : vector<2x128xf32>
    %179 = tpu.matmul %33, %178, %cst_34 {dimension_numbers = #tpu.dot_dimension_numbers<[1], [0], [0], [1], [0, 0, 1, 1], [], []>} : vector<2x64xf32>, vector<64x128xf32>, vector<2x128xf32> -> vector<2x128xf32>
    %180 = arith.addf %177, %179 : vector<2x128xf32>
    %c0_35 = arith.constant 0 : index
    %c0_36 = arith.constant 0 : index
    %181 = vector.load %arg8[%c0_35, %c0_36] : memref<1x128xf32, #tpu.memory_space<vmem>>, vector<1x128xf32>
    %182 = vector.broadcast %181 : vector<1x128xf32> to vector<2x128xf32>
    %183 = arith.addf %180, %182 : vector<2x128xf32>
    %c0_37 = arith.constant 0 : index
    %c0_38 = arith.constant 0 : index
    %184 = vector.load %arg9[%c0_37, %c0_38] : memref<2x128xf32, #tpu.memory_space<vmem>>, vector<2x128xf32>
    tpu.vector_store %arg9[%c0_37, %c0_38], %183 {strides = array<i32>} : memref<2x128xf32, #tpu.memory_space<vmem>>, vector<2x128xf32>,
    return
  }
}

</mosaic_0001>

<bundles_post_ra>
// kernel: tpu_custom_call.1
= control target key start
LH: loop header
LB: loop body
LE: loop exit
PB: predicated region body
PF: predicated region fallthrough
CT: control target
= control target key end

     0   :  { %16 = vsyncpa [#allocation3], 0  ;;  %s2123_s0 = inlined_call_operand.vmem [shape: s32[16,1], index: 0, kind: input, shape index: {}]   ;;  %s2124_s1 = inlined_call_operand.hbm [shape: f32[16,512], index: 1, kind: input, shape index: {}]   ;;  %s2125_s2 = inlined_call_operand.vmem [shape: f32[1,512], index: 2, kind: input, shape index: {}]   ;;  %s2126_s3 = inlined_call_operand.hbm [shape: f32[64,256], index: 3, kind: input, shape index: {}]   ;;  %s2127_s4 = inlined_call_operand.vmem [shape: f32[2,64], index: 4, kind: input, shape index: {}]   ;;  %s2128_s5 = inlined_call_operand.vmem [shape: f32[2,64], index: 5, kind: input, shape index: {}]   ;;  %s2129_s6 = inlined_call_operand.hbm [shape: f32[64,128], index: 6, kind: input, shape index: {}]   ;;  %s2130_s7 = inlined_call_operand.hbm [shape: f32[64,128], index: 7, kind: input, shape index: {}]   ;;  %s2131_s8 = inlined_call_operand.vmem [shape: f32[1,128], index: 8, kind: input, shape index: {}]   ;;  %s2132_s9 = inlined_call_operand.hbm [shape: f32[2,128], index: 9, kind: output, shape index: {0}]   ;;  %s2133_s10 = inlined_call_operand.hbm [shape: f32[2,128], index: 10, kind: output, shape index: {1}]  }
   0x1   :  { %17 = vsyncpa [#allocation6], 0 }
   0x2   :  { %18 = vsyncpa [#allocation9], 0 }
   0x3   :  { %19 = vsyncpa [#allocation4], 0 }
   0x4   :  { %20 = vsyncpa [#allocation12], 0  ;;  %s1748_s13 = smov [#allocation5]  }
   0x5   :  { %s42_s14 = sshll.u32 %s1748_s13, 4  ;;  %s43_s14 = int_to_ptr.vmem [resolvable:$true] %s42_s14 }
   0x6   :  { %s1626_s15 = scalar_lea.vmem %s43_s14, 2048  ;;  %p1631_p1 = scmp.lt.s32.totalorder %s43_s14, %s43_s14 }
   0x7   :  { %p1627_p0 = scmp.ne.s32.totalorder %s43_s14, %s1626_s15  ;;  %p1632_p2 = scmp.lt.s32.totalorder %s1626_s15, %s1626_s15 }
   0x9   :  { %p1633_p3 = por %p1632_p2, %p1631_p1 }
   0xb   :  { %p1634_p4 = pnand %p1633_p3, %p1627_p0 }
   0xd   :  { %1637 = shalt.err (!%p1634_p4)
}
   0xe   :  { %s1749_s16 = smov 256   ;;  %s1750_s17 = smov 16  }
   0xf   :  { %48 = dma.hbm_to_vmem [thread:$0]  %s2126_s3, 2048, %s43_s14, [#allocation6], %s1749_s16, %s1749_s16, %s1750_s17  }
  0x10   :  { %s1751_s20 = smov [#allocation2]  }
  0x11   :  { %s28_s21 = sshll.u32 %s1751_s20, 4  ;;  %s29_s21 = int_to_ptr.vmem [resolvable:$true] %s28_s21 }
  0x12   :  { %s1646_s22 = scalar_lea.vmem %s29_s21, 1024  ;;  %p1651_p6 = scmp.lt.s32.totalorder %s29_s21, %s29_s21 }
  0x13   :  { %p1647_p5 = scmp.ne.s32.totalorder %s29_s21, %s1646_s22  ;;  %p1652_p7 = scmp.lt.s32.totalorder %s1646_s22, %s1646_s22 }
  0x15   :  { %p1653_p8 = por %p1652_p7, %p1651_p6 }
  0x17   :  { %p1654_p9 = pnand %p1653_p8, %p1647_p5 }
  0x19   :  { %1657 = shalt.err (!%p1654_p9)
}
  0x1a   :  { %s1752_s23 = smov 512   ;;  %s1753_s24 = smov 32  }
  0x1b   :  { %34 = dma.hbm_to_vmem [thread:$0]  %s2124_s1, 1024, %s29_s21, [#allocation3], %s1752_s23, %s1752_s23, %s1753_s24  }
  0x1c   :  { %s1754_s27 = smov [#allocation7]  }
  0x1d   :  { %s58_s28 = sshll.u32 %s1754_s27, 4  ;;  %s59_s28 = int_to_ptr.vmem [resolvable:$true] %s58_s28 }
  0x1e   :  { %s1666_s3 = scalar_lea.vmem %s59_s28, 1024  ;;  %p1671_p11 = scmp.lt.s32.totalorder %s59_s28, %s59_s28 }
  0x1f   :  { %p1667_p10 = scmp.ne.s32.totalorder %s59_s28, %s1666_s3  ;;  %p1672_p12 = scmp.lt.s32.totalorder %s1666_s3, %s1666_s3 }
  0x21   :  { %p1673_p13 = por %p1672_p12, %p1671_p11 }
  0x23   :  { %p1674_p0 = pnand %p1673_p13, %p1667_p10 }
  0x25   :  { %1677 = shalt.err (!%p1674_p0)
}
  0x26   :  { %s1755_s29 = smov 128   ;;  %s1756_s30 = smov 8  }
  0x27   :  { %64 = dma.hbm_to_vmem [thread:$0]  %s2129_s6, 1024, %s59_s28, [#allocation6], %s1755_s29, %s1755_s29, %s1756_s30  }
  0x28   :  { %s1757_s13 = smov [#allocation8]  }
  0x29   :  { %s70_s14 = sshll.u32 %s1757_s13, 4  ;;  %s71_s14 = int_to_ptr.vmem [resolvable:$true] %s70_s14 }
  0x2a   :  { %s1686_s1 = scalar_lea.vmem %s71_s14, 1024  ;;  %p1691_p2 = scmp.lt.s32.totalorder %s71_s14, %s71_s14 }
  0x2b   :  { %p1687_p1 = scmp.ne.s32.totalorder %s71_s14, %s1686_s1  ;;  %p1692_p3 = scmp.lt.s32.totalorder %s1686_s1, %s1686_s1 }
  0x2d   :  { %p1693_p4 = por %p1692_p3, %p1691_p2 }
  0x2f   :  { %p1694_p5 = pnand %p1693_p4, %p1687_p1 }
  0x31   :  { %1697 = shalt.err (!%p1694_p5)
}
  0x32   :  { %76 = dma.hbm_to_vmem [thread:$0]  %s2130_s7, 1024, %s71_s14, [#allocation9], %s1755_s29, %s1755_s29, %s1756_s30  }
  0x33   :  { %1738 = dma.done.wait [#allocation3], 1024  }
  0x34   :  { %1739 = vsyncadd [#allocation3], 4294966272 }
  0x35   :  { %1740 = dma.done.wait [#allocation6], 3072  }
  0x36   :  { %1741 = vsyncadd [#allocation6], 4294964224 }
  0x37   :  { %1742 = dma.done.wait [#allocation9], 1024  }
  0x38   :  { %1743 = vsyncadd [#allocation9], 4294966272  ;;  %v1758_v0 = vmov 0   ;;  %v1759_v1 = vmov 0.0   ;;  %v91_v2 = vld [vmem:[%s2123_s0] sm:$0xff]  ;;  %v92_v3 = vld [vmem:[%s2123_s0 + $0x8] sm:$0xff]  ;;  %v93_v14 = vlaneseq }
  0x39   :  { %1521 = vset.pattern.permute.xlu0 %v1758_v0  ;;  %208 = vmatprep.mubr.f32.mxu0 %v1759_v1  ;;  %v112_v4 = vld [vmem:[#allocation2 + $0x28] sm:$0xff]  ;;  %v111_v5 = vld [vmem:[#allocation2 + $0x20] sm:$0xff]  ;;  %v114_v6 = vld [vmem:[#allocation2 + $0x38] sm:$0xff]  ;;  %s1760_s20 = smov 64   ;;  %vm137_vm0 = vcmask 130048   ;;  %vm324_vm3 = vcmask 523264  }
  0x3a   :  { %285 = vmatprep.mubr.f32.mxu1 %v1759_v1  ;;  %96 = vperm.xlu0 %1521, %v91_v2   ;;  %v108_v7 = vld [vmem:[#allocation2 + $0x8] sm:$0xff]  ;;  %v113_v8 = vld [vmem:[#allocation2 + $0x30] sm:$0xff]  ;;  %v107_v9 = vld [vmem:[#allocation2] sm:$0xff]  ;;  %v94_v15 = vand.u32 127, %v93_v14  ;;  %v118_v36 = vshrl.u32 %v93_v14, 7  ;;  %vm1761_vm4 = vmmov 0  }
  0x3b   :  { %172 = vmatprep.subr.mxu0 %v112_v4  ;;  %249 = vmatprep.subr.mxu1 %v114_v6  ;;  %v110_v10 = vld [vmem:[#allocation2 + $0x18] sm:$0xff]  ;;  %v109_v11 = vld [vmem:[#allocation2 + $0x10] sm:$0xff]  ;;  %v315_v13 = vld [vmem:[%s2128_s5] sm:$0x3] }
  0x3c   :  { %173 = vmatpush1.msra.mxu0 %v111_v5  ;;  %250 = vmatpush1.msra.mxu1 %v113_v8  ;;  %v1839_v12 = vld [vmem:[#allocation5 + $0x78] sm:$0xff]  ;;  %v1848_v17 = vld [vmem:[#allocation5 + $0x70] sm:$0xff]  ;;  %v1851_v19 = vld [vmem:[#allocation5 + $0x68] sm:$0xff]  ;;  %v127_v37 = vsub.s32 2, %v118_v36  ;;  %v131_v39 = vsub.s32 3, %v118_v36  ;;  %v119_v41 = vsub.s32 0, %v118_v36 }
  0x3d   :  { %174 = vmatprep.subr.mxu0 %v108_v7  ;;  %251 = vmatprep.subr.mxu1 %v110_v10  ;;  %v1855_v20 = vld [vmem:[#allocation5 + $0x60] sm:$0xff]  ;;  %v1859_v22 = vld [vmem:[#allocation5 + $0x58] sm:$0xff]  ;;  %v1863_v23 = vld [vmem:[#allocation5 + $0x50] sm:$0xff]  ;;  %v123_v46 = vsub.s32 1, %v118_v36 }
  0x3e   :  { %175 = vmatpush1.msra.mxu0 %v107_v9  ;;  %99 = vperm.xlu0 %1521, %v92_v3   ;;  %v1867_v25 = vld [vmem:[#allocation5 + $0x48] sm:$0xff]  ;;  %v1872_v26 = vld [vmem:[#allocation5 + $0x40] sm:$0xff]  ;;  %v1876_v27 = vld [vmem:[#allocation5 + $0x38] sm:$0xff] }
  0x3f   :  { %252 = vmatpush1.msra.mxu1 %v109_v11  ;;  %344 = vmatprep.subr.mxu0 %v1839_v12  ;;  %v1879_v28 = vld [vmem:[#allocation5 + $0x30] sm:$0xff]  ;;  %v1883_v29 = vld [vmem:[#allocation5 + $0x28] sm:$0xff]  ;;  %v1887_v30 = vld [vmem:[#allocation5 + $0x20] sm:$0xff] }
  0x40   :  { %454 = vmatprep.subr.mxu1 %v1839_v12  ;;  %415 = vrot.lane.b32.xlu1 %v315_v13, %s1760_s20  ;;  %v1891_v31 = vld [vmem:[#allocation5 + $0x18] sm:$0xff]  ;;  %v1895_v32 = vld [vmem:[#allocation5 + $0x10] sm:$0xff]  ;;  %v1899_v33 = vld [vmem:[#allocation5 + $0x8] sm:$0xff] }
  0x41   :  { %v1903_v34 = vld [vmem:[#allocation5] sm:$0xff] }
  0x42   :  { %v314_v35 = vld [vmem:[%s2127_s4] sm:$0x3] }
  0x43   :  { %v115_v38 = vld [vmem:[%s2125_s2] sm:$0xf]  ;;  %s1762_s2 = smov [#allocation11]  }
  0x44   :  { %v128_v40 = vrot.slane %v115_v38, %v127_v37  ;;  %v132_v42 = vrot.slane %v115_v38, %v131_v39  ;;  %v120_v49 = vrot.slane %v115_v38, %v119_v41  ;;  %v124_v54 = vrot.slane %v115_v38, %v123_v46  ;;  %s1401_s23 = sshll.u32 %s1762_s2, 4  ;;  %s1402_s23 = int_to_ptr.vmem [resolvable:$true] %s1401_s23 }
  0x45   :  { %s1698_s24 = scalar_lea.vmem %s1402_s23, 32  ;;  %p1703_p7 = scmp.lt.s32.totalorder %s1402_s23, %s1402_s23 }
  0x46   :  { %p1699_p6 = scmp.ne.s32.totalorder %s1402_s23, %s1698_s24  ;;  %p1704_p8 = scmp.lt.s32.totalorder %s1698_s24, %s1698_s24 }
  0x48   :  { %p1705_p9 = por %p1704_p8, %p1703_p7 }
  0x4a   :  { %p1706_p10 = pnand %p1705_p9, %p1699_p6 }
  0xb5   :  { %v97_v16 = vpop.permute.xlu0 %96 }
  0xb6   :  { %vm101_vm1 = vcmp.eq.s32.totalorder %v97_v16, %v94_v15 }
  0xb7   :  { %v1416_v18 = vsel %vm101_vm1, 1.0, %v1759_v1 }
  0xb8   :  { %1418 = vmatmul.mubr.msk.f32.vlgmr.msra.gmra.mxu0 %vm137_vm0, %v1416_v18  ;;  %1420 = vmatmul.mubr.msk.f32.vlgmr.msra.gmra.mxu1 %vm137_vm0, %v1416_v18 }
  0xb9   :  { %345 = vmatpush1.msra.mxu0 %v1848_v17  ;;  %v100_v21 = vpop.permute.xlu0 %99  ;;  %214 = vmatprep.mubr.f32.mxu0 %v1759_v1 }
  0xba   :  { %346 = vmatprep.subr.mxu0 %v1851_v19  ;;  %vm102_vm2 = vcmp.eq.s32.totalorder %v100_v21, %v94_v15  ;;  %291 = vmatprep.mubr.f32.mxu1 %v1759_v1 }
  0xbb   :  { %v1417_v24 = vsel %vm102_vm2, 1.0, %v1759_v1  ;;  %347 = vmatpush1.msra.mxu0 %v1855_v20  ;;  %455 = vmatpush1.msra.mxu1 %v1848_v17 }
  0xbc   :  { %348 = vmatprep.subr.mxu0 %v1859_v22  ;;  %1419 = vmatmul.mubr.msk.f32.gmra.mxu0 %vm137_vm0, %v1417_v24 }
  0xbd   :  { %1421 = vmatmul.mubr.msk.f32.gmra.mxu1 %vm137_vm0, %v1417_v24  ;;  %349 = vmatpush1.msra.mxu0 %v1863_v23 }
  0xbe   :  { %350 = vmatprep.subr.mxu0 %v1867_v25  ;;  %392 = vmatprep.mubr.f32.mxu0 %v1759_v1 }
  0xbf   :  { %351 = vmatpush1.msra.mxu0 %v1872_v26  ;;  %456 = vmatprep.subr.mxu1 %v1851_v19 }
  0xc0   :  { %352 = vmatprep.subr.mxu0 %v1876_v27  ;;  %457 = vmatpush1.msra.mxu1 %v1855_v20 }
  0xc1   :  { %353 = vmatpush1.msra.mxu0 %v1879_v28  ;;  %458 = vmatprep.subr.mxu1 %v1859_v22 }
  0xc2   :  { %354 = vmatprep.subr.mxu0 %v1883_v29  ;;  %459 = vmatpush1.msra.mxu1 %v1863_v23 }
  0xc3   :  { %355 = vmatpush1.msra.mxu0 %v1887_v30  ;;  %460 = vmatprep.subr.mxu1 %v1867_v25 }
  0xc4   :  { %356 = vmatprep.subr.mxu0 %v1891_v31  ;;  %461 = vmatpush1.msra.mxu1 %v1872_v26 }
  0xc5   :  { %357 = vmatpush1.msra.mxu0 %v1895_v32  ;;  %462 = vmatprep.subr.mxu1 %v1876_v27 }
  0xc6   :  { %358 = vmatprep.subr.mxu0 %v1899_v33  ;;  %463 = vmatpush1.msra.mxu1 %v1879_v28 }
  0xc7   :  { %359 = vmatpush1.msra.mxu0 %v1903_v34  ;;  %464 = vmatprep.subr.mxu1 %v1883_v29 }
  0xc8   :  { %1422 = vmatmul.mubr.msk.f32.vlgmr.msra.gmra.mxu0 %vm324_vm3, %v314_v35  ;;  %465 = vmatpush1.msra.mxu1 %v1887_v30 }
  0xc9   :  { %466 = vmatprep.subr.mxu1 %v1891_v31  ;;  %502 = vmatprep.mubr.f32.mxu1 %v1759_v1 }
  0xca   :  { %467 = vmatpush1.msra.mxu1 %v1895_v32  ;;  %564 = vmatprep.subr.mxu0 %v1839_v12 }
  0xcb   :  { %468 = vmatprep.subr.mxu1 %v1899_v33  ;;  %565 = vmatpush1.msra.mxu0 %v1848_v17 }
  0xcc   :  { %469 = vmatpush1.msra.mxu1 %v1903_v34  ;;  %566 = vmatprep.subr.mxu0 %v1851_v19 }
  0xcd   :  { %567 = vmatpush1.msra.mxu0 %v1855_v20  ;;  %612 = vmatprep.mubr.f32.mxu0 %v1759_v1 }
  0xce   :  { %568 = vmatprep.subr.mxu0 %v1859_v22  ;;  %674 = vmatprep.subr.mxu1 %v1839_v12 }
  0xcf   :  { %569 = vmatpush1.msra.mxu0 %v1863_v23 }
  0xd0   :  { %570 = vmatprep.subr.mxu0 %v1867_v25 }
  0xd1   :  { %571 = vmatpush1.msra.mxu0 %v1872_v26 }
  0xd2   :  { %572 = vmatprep.subr.mxu0 %v1876_v27 }
  0xd3   :  { %573 = vmatpush1.msra.mxu0 %v1879_v28 }
  0xd4   :  { %574 = vmatprep.subr.mxu0 %v1883_v29 }
  0xd5   :  { %575 = vmatpush1.msra.mxu0 %v1887_v30 }
  0xd6   :  { %576 = vmatprep.subr.mxu0 %v1891_v31 }
  0xd7   :  { %577 = vmatpush1.msra.mxu0 %v1895_v32 }
  0xd8   :  { %578 = vmatprep.subr.mxu0 %v1899_v33 }
  0xd9   :  { %579 = vmatpush1.msra.mxu0 %v1903_v34 }
  0xda   :  { %792 = vmatprep.subr.mxu0 %v1839_v12 }
 0x178   :  { %v210_v43 = vpop.f32.mrf.mxu0  ;;  %v287_v44 = vpop.f32.mrf.mxu1 }
 0x179   :  { %v288_v45 = vadd.f32 %v287_v44, %v128_v40  ;;  %v211_v2 = vadd.f32 %v210_v43, %v120_v49  ;;  %v416_v43 = vpop.permute.xlu1 %415 }
 0x17a   :  { %v212_v47 = vpop.f32.mrf.mxu0  ;;  %v289_v48 = vpop.f32.mrf.mxu1 }
 0x17b   :  { %v290_v50 = vadd.f32 %v289_v48, %v132_v42  ;;  %v764_v52 = vrot.slane %v288_v45, 6  ;;  %v874_v53 = vrot.slane %v288_v45, 2  ;;  %v213_v7 = vadd.f32 %v212_v47, %v124_v54 }
 0x17c   :  { %v216_v51 = vpop.f32.mrf.mxu0 }
 0x17d   :  { %v217_v55 = vadd.f32 %v216_v51, %v120_v49  ;;  %v293_v56 = vpop.f32.mrf.mxu1  ;;  %v765_v57 = vrot.slane %v290_v50, 6  ;;  %v875_v60 = vrot.slane %v290_v50, 2 }
 0x17e   :  { %v294_v58 = vadd.f32 %v293_v56, %v128_v40  ;;  %v218_v59 = vpop.f32.mrf.mxu0 }
 0x17f   :  { %v1945_v61 = vadd.f32 %v874_v53, %v217_v55  ;;  %v219_v62 = vadd.f32 %v218_v59, %v124_v54  ;;  %v295_v63 = vpop.f32.mrf.mxu1  ;;  %v1947_v0 = vadd.f32 %v764_v52, %v217_v55 }
 0x180   :  { %v427_v3 = vrot.slane %v294_v58, 2  ;;  %v296_v4 = vadd.f32 %v295_v63, %v132_v42  ;;  %v318_v10 = vrot.slane %v294_v58, 6 }
 0x181   :  { %v1949_v5 = vadd.f32 %v875_v60, %v219_v62  ;;  %v1951_v6 = vadd.f32 %v765_v57, %v219_v62 }
 0x182   :  { %v428_v8 = vrot.slane %v296_v4, 2  ;;  %v1953_v9 = vadd.f32 %v427_v3, %v211_v2  ;;  %v1957_v13 = vadd.f32 %v318_v10, %v211_v2  ;;  %v319_v18 = vrot.slane %v296_v4, 6 }
 0x184   :  { %v1955_v11 = vadd.f32 %v428_v8, %v213_v7  ;;  %v1960_v24 = vadd.f32 %v319_v18, %v213_v7 }
 0x188   :  { %v394_v14 = vpop.f32.mrf.mxu0 }
 0x189   :  { %v399_v15 = vadd.f32 %v394_v14, %v1957_v13 }
 0x18a   :  { %v396_v21 = vpop.f32.mrf.mxu0 }
 0x18b   :  { %v1423_v16 = vmul.f32 -1.442695, %v399_v15  ;;  %v400_v35 = vadd.f32 %v396_v21, %v1960_v24 }
 0x18d   :  { %1522 = vpow2.f32 %v1423_v16  ;;  %v1424_v41 = vmul.f32 -1.442695, %v400_v35 }
 0x18e   :  { %1524 = vtanh.f32 %v400_v35 }
 0x19a   :  { %v1523_v36 = vpop.eup %1522 }
 0x19b   :  { %v407_v37 = vadd.f32 1.0, %v1523_v36  ;;  %v1525_v38 = vpop.eup %1524 }
 0x19d   :  { %1526 = vrcp.f32 %v407_v37 }
 0x19e   :  { %1528 = vpow2.f32 %v1424_v41 }
 0x1aa   :  { %v1527_v39 = vpop.eup %1526 }
 0x1ab   :  { %v419_v40 = vmul.f32 %v1527_v39, %v1525_v38  ;;  %v1529_v42 = vpop.eup %1528  ;;  %v418_v45 = vmul.f32 %v1527_v39, %v416_v43 }
 0x1ac   :  { %v408_v44 = vadd.f32 1.0, %v1529_v42 }
 0x1ad   :  { %421 = vrot.lane.b32.xlu1 %v419_v40, %s1760_s20 }
 0x1ae   :  { %1530 = vrcp.f32 %v408_v44 }
 0x1bb   :  { %v1531_v48 = vpop.eup %1530 }
 0x21f   :  { %v422_v46 = vpop.permute.xlu1 %421 }
 0x220   :  { %v424_v47 = vadd.f32 %v422_v46, %v418_v45 }
 0x222   :  { %1532 = vtanh.f32 %v424_v47  ;;  %v531_v63 = vrot.slane %v424_v47, 6 }
 0x22f   :  { %v1533_v49 = vpop.eup %1532 }
 0x230   :  { %v426_v50 = vmul.f32 %v1533_v49, %v1531_v48 }
 0x232   :  { %434 = vrot.lane.b32.xlu0 %v426_v50, %s1760_s20 }
 0x2a4   :  { %v1965_v51 = vpop.permute.xlu0 %434 }
 0x2a5   :  { %1425 = vmatmul.mubr.msk.f32.vlgmr.msra.gmra.mxu1 %vm324_vm3, %v1965_v51 }
 0x2a6   :  { %675 = vmatpush1.msra.mxu1 %v1848_v17  ;;  %722 = vmatprep.mubr.f32.mxu1 %v1759_v1 }
 0x2a7   :  { %676 = vmatprep.subr.mxu1 %v1851_v19 }
 0x2a8   :  { %677 = vmatpush1.msra.mxu1 %v1855_v20 }
 0x2a9   :  { %678 = vmatprep.subr.mxu1 %v1859_v22 }
 0x2aa   :  { %679 = vmatpush1.msra.mxu1 %v1863_v23 }
 0x2ab   :  { %680 = vmatprep.subr.mxu1 %v1867_v25 }
 0x2ac   :  { %681 = vmatpush1.msra.mxu1 %v1872_v26 }
 0x2ad   :  { %682 = vmatprep.subr.mxu1 %v1876_v27 }
 0x2ae   :  { %683 = vmatpush1.msra.mxu1 %v1879_v28 }
 0x2af   :  { %684 = vmatprep.subr.mxu1 %v1883_v29 }
 0x2b0   :  { %685 = vmatpush1.msra.mxu1 %v1887_v30 }
 0x2b1   :  { %686 = vmatprep.subr.mxu1 %v1891_v31 }
 0x2b2   :  { %687 = vmatpush1.msra.mxu1 %v1895_v32 }
 0x2b3   :  { %688 = vmatprep.subr.mxu1 %v1899_v33 }
 0x2b4   :  { %689 = vmatpush1.msra.mxu1 %v1903_v34 }
 0x2b5   :  { %901 = vmatprep.subr.mxu1 %v1839_v12 }
 0x365   :  { %v504_v52 = vpop.f32.mrf.mxu1 }
 0x366   :  { %v511_v53 = vrot.slane %v504_v52, 6 }
 0x367   :  { %v506_v56 = vpop.f32.mrf.mxu1 }
 0x368   :  { %v515_v54 = vadd.f32 %v511_v53, %v1953_v9  ;;  %v512_v57 = vrot.slane %v506_v56, 6 }
 0x36a   :  { %v1426_v55 = vmul.f32 -1.442695, %v515_v54  ;;  %v516_v58 = vadd.f32 %v512_v57, %v1955_v11 }
 0x36c   :  { %1534 = vpow2.f32 %v1426_v55  ;;  %v1427_v7 = vmul.f32 -1.442695, %v516_v58 }
 0x36d   :  { %1536 = vtanh.f32 %v516_v58 }
 0x379   :  { %v1535_v59 = vpop.eup %1534 }
 0x37a   :  { %v523_v60 = vadd.f32 1.0, %v1535_v59  ;;  %v1537_v62 = vpop.eup %1536 }
 0x37c   :  { %1538 = vrcp.f32 %v523_v60 }
 0x37d   :  { %1540 = vpow2.f32 %v1427_v7 }
 0x389   :  { %v1539_v2 = vpop.eup %1538 }
 0x38a   :  { %v534_v3 = vmul.f32 %v1539_v2, %v1537_v62  ;;  %v533_v4 = vmul.f32 %v1539_v2, %v531_v63  ;;  %v1541_v8 = vpop.eup %1540 }
 0x38b   :  { %v524_v10 = vadd.f32 1.0, %v1541_v8 }
 0x38c   :  { %536 = vrot.lane.b32.xlu1 %v534_v3, %s1760_s20 }
 0x38d   :  { %1542 = vrcp.f32 %v524_v10 }
 0x39a   :  { %v1543_v16 = vpop.eup %1542 }
 0x3fe   :  { %v537_v14 = vpop.permute.xlu1 %536 }
 0x3ff   :  { %v539_v15 = vadd.f32 %v537_v14, %v533_v4 }
 0x401   :  { %1544 = vtanh.f32 %v539_v15  ;;  %v641_v47 = vrot.slane %v539_v15, 6 }
 0x40e   :  { %v1545_v18 = vpop.eup %1544 }
 0x40f   :  { %v541_v21 = vmul.f32 %v1545_v18, %v1543_v16 }
 0x411   :  { %v543_v35 = vrot.slane %v541_v21, 2 }
 0x413   :  { %544 = vrot.lane.b32.xlu0 %v543_v35, %s1760_s20 }
 0x485   :  { %v545_v36 = vpop.permute.xlu0 %544 }
 0x486   :  { %1428 = vmatmul.mubr.msk.f32.vlgmr.msra.gmra.mxu0 %vm324_vm3, %v545_v36 }
 0x487   :  { %793 = vmatpush1.msra.mxu0 %v1848_v17  ;;  %840 = vmatprep.mubr.f32.mxu0 %v1759_v1 }
 0x488   :  { %794 = vmatprep.subr.mxu0 %v1851_v19 }
 0x489   :  { %795 = vmatpush1.msra.mxu0 %v1855_v20 }
 0x48a   :  { %796 = vmatprep.subr.mxu0 %v1859_v22 }
 0x48b   :  { %797 = vmatpush1.msra.mxu0 %v1863_v23 }
 0x48c   :  { %798 = vmatprep.subr.mxu0 %v1867_v25 }
 0x48d   :  { %799 = vmatpush1.msra.mxu0 %v1872_v26 }
 0x48e   :  { %800 = vmatprep.subr.mxu0 %v1876_v27 }
 0x48f   :  { %801 = vmatpush1.msra.mxu0 %v1879_v28 }
 0x490   :  { %802 = vmatprep.subr.mxu0 %v1883_v29 }
 0x491   :  { %803 = vmatpush1.msra.mxu0 %v1887_v30 }
 0x492   :  { %804 = vmatprep.subr.mxu0 %v1891_v31 }
 0x493   :  { %805 = vmatpush1.msra.mxu0 %v1895_v32 }
 0x494   :  { %806 = vmatprep.subr.mxu0 %v1899_v33 }
 0x495   :  { %807 = vmatpush1.msra.mxu0 %v1903_v34 }
 0x496   :  { %1011 = vmatprep.subr.mxu0 %v1839_v12 }
 0x546   :  { %v614_v37 = vpop.f32.mrf.mxu0 }
 0x547   :  { %v621_v38 = vrot.slane %v614_v37, 4 }
 0x548   :  { %v616_v41 = vpop.f32.mrf.mxu0 }
 0x549   :  { %v625_v39 = vadd.f32 %v621_v38, %v1957_v13  ;;  %v622_v42 = vrot.slane %v616_v41, 4 }
 0x54b   :  { %v1429_v40 = vmul.f32 -1.442695, %v625_v39  ;;  %v626_v43 = vadd.f32 %v622_v42, %v1960_v24 }
 0x54d   :  { %1546 = vpow2.f32 %v1429_v40  ;;  %v1430_v52 = vmul.f32 -1.442695, %v626_v43 }
 0x54e   :  { %1548 = vtanh.f32 %v626_v43 }
 0x55a   :  { %v1547_v44 = vpop.eup %1546 }
 0x55b   :  { %v633_v45 = vadd.f32 1.0, %v1547_v44  ;;  %v1549_v46 = vpop.eup %1548 }
 0x55d   :  { %1550 = vrcp.f32 %v633_v45 }
 0x55e   :  { %1552 = vpow2.f32 %v1430_v52 }
 0x56a   :  { %v1551_v48 = vpop.eup %1550 }
 0x56b   :  { %v644_v49 = vmul.f32 %v1551_v48, %v1549_v46  ;;  %v643_v50 = vmul.f32 %v1551_v48, %v641_v47  ;;  %v1553_v13 = vpop.eup %1552 }
 0x56c   :  { %v634_v53 = vadd.f32 1.0, %v1553_v13 }
 0x56d   :  { %646 = vrot.lane.b32.xlu1 %v644_v49, %s1760_s20 }
 0x56e   :  { %1554 = vrcp.f32 %v634_v53 }
 0x57b   :  { %v1555_v24 = vpop.eup %1554 }
 0x5df   :  { %v647_v54 = vpop.permute.xlu1 %646 }
 0x5e0   :  { %v649_v55 = vadd.f32 %v647_v54, %v643_v50 }
 0x5e2   :  { %1556 = vtanh.f32 %v649_v55  ;;  %v751_v15 = vrot.slane %v649_v55, 6 }
 0x5ef   :  { %v1557_v56 = vpop.eup %1556 }
 0x5f0   :  { %v651_v57 = vmul.f32 %v1557_v56, %v1555_v24 }
 0x5f2   :  { %v653_v58 = vrot.slane %v651_v57, 4 }
 0x5f4   :  { %654 = vrot.lane.b32.xlu0 %v653_v58, %s1760_s20 }
 0x666   :  { %v655_v59 = vpop.permute.xlu0 %654 }
 0x667   :  { %1431 = vmatmul.mubr.msk.f32.vlgmr.msra.gmra.mxu1 %vm324_vm3, %v655_v59 }
 0x668   :  { %902 = vmatpush1.msra.mxu1 %v1848_v17  ;;  %949 = vmatprep.mubr.f32.mxu1 %v1759_v1 }
 0x669   :  { %903 = vmatprep.subr.mxu1 %v1851_v19 }
 0x66a   :  { %904 = vmatpush1.msra.mxu1 %v1855_v20 }
 0x66b   :  { %905 = vmatprep.subr.mxu1 %v1859_v22 }
 0x66c   :  { %906 = vmatpush1.msra.mxu1 %v1863_v23 }
 0x66d   :  { %907 = vmatprep.subr.mxu1 %v1867_v25 }
 0x66e   :  { %908 = vmatpush1.msra.mxu1 %v1872_v26 }
 0x66f   :  { %909 = vmatprep.subr.mxu1 %v1876_v27 }
 0x670   :  { %910 = vmatpush1.msra.mxu1 %v1879_v28 }
 0x671   :  { %911 = vmatprep.subr.mxu1 %v1883_v29 }
 0x672   :  { %912 = vmatpush1.msra.mxu1 %v1887_v30 }
 0x673   :  { %913 = vmatprep.subr.mxu1 %v1891_v31 }
 0x674   :  { %914 = vmatpush1.msra.mxu1 %v1895_v32 }
 0x675   :  { %915 = vmatprep.subr.mxu1 %v1899_v33 }
 0x676   :  { %916 = vmatpush1.msra.mxu1 %v1903_v34 }
 0x677   :  { %1121 = vmatprep.subr.mxu1 %v1839_v12 }
 0x727   :  { %v724_v60 = vpop.f32.mrf.mxu1 }
 0x728   :  { %v731_v62 = vrot.slane %v724_v60, 2 }
 0x729   :  { %v726_v3 = vpop.f32.mrf.mxu1 }
 0x72a   :  { %v735_v63 = vadd.f32 %v731_v62, %v1953_v9  ;;  %v732_v4 = vrot.slane %v726_v3, 2 }
 0x72c   :  { %v1432_v2 = vmul.f32 -1.442695, %v735_v63  ;;  %v736_v7 = vadd.f32 %v732_v4, %v1955_v11 }
 0x72e   :  { %1558 = vpow2.f32 %v1432_v2  ;;  %v1433_v12 = vmul.f32 -1.442695, %v736_v7 }
 0x72f   :  { %1560 = vtanh.f32 %v736_v7 }
 0x73b   :  { %v1559_v8 = vpop.eup %1558 }
 0x73c   :  { %v743_v10 = vadd.f32 1.0, %v1559_v8  ;;  %v1561_v14 = vpop.eup %1560 }
 0x73e   :  { %1562 = vrcp.f32 %v743_v10 }
 0x73f   :  { %1564 = vpow2.f32 %v1433_v12  ;;  %v1227_v12 = vld [vmem:[#allocation8 + $0x20] sm:$0xff] }
 0x74b   :  { %v1563_v16 = vpop.eup %1562 }
 0x74c   :  { %v754_v18 = vmul.f32 %v1563_v16, %v1561_v14  ;;  %v753_v21 = vmul.f32 %v1563_v16, %v751_v15  ;;  %v1565_v9 = vpop.eup %1564  ;;  %v1230_v15 = vld [vmem:[#allocation8 + $0x38] sm:$0xff] }
 0x74d   :  { %v744_v35 = vadd.f32 1.0, %v1565_v9  ;;  %v1226_v9 = vld [vmem:[#allocation8 + $0x18] sm:$0xff] }
 0x74e   :  { %756 = vrot.lane.b32.xlu1 %v754_v18, %s1760_s20  ;;  %v1229_v18 = vld [vmem:[#allocation8 + $0x30] sm:$0xff] }
 0x74f   :  { %1566 = vrcp.f32 %v744_v35  ;;  %v1225_v35 = vld [vmem:[#allocation8 + $0x10] sm:$0xff] }
 0x75c   :  { %v1567_v11 = vpop.eup %1566 }
 0x7c0   :  { %v757_v36 = vpop.permute.xlu1 %756 }
 0x7c1   :  { %v759_v37 = vadd.f32 %v757_v36, %v753_v21  ;;  %v1228_v21 = vld [vmem:[#allocation8 + $0x28] sm:$0xff] }
 0x7c2   :  { %v1224_v36 = vld [vmem:[#allocation8 + $0x8] sm:$0xff] }
 0x7c3   :  { %1568 = vtanh.f32 %v759_v37  ;;  %v863_v50 = vrot.slane %v759_v37, 6  ;;  %v1223_v37 = vld [vmem:[#allocation8] sm:$0xff] }
 0x7d0   :  { %v1569_v38 = vpop.eup %1568 }
 0x7d1   :  { %v761_v39 = vmul.f32 %v1569_v38, %v1567_v11 }
 0x7d3   :  { %v771_v40 = vrot.slane %v761_v39, 6 }
 0x7d5   :  { %772 = vrot.lane.b32.xlu0 %v771_v40, %s1760_s20 }
 0x847   :  { %v773_v41 = vpop.permute.xlu0 %772 }
 0x848   :  { %1434 = vmatmul.mubr.msk.f32.vlgmr.msra.gmra.mxu0 %vm324_vm3, %v773_v41 }
 0x849   :  { %1012 = vmatpush1.msra.mxu0 %v1848_v17  ;;  %1059 = vmatprep.mubr.f32.mxu0 %v1759_v1 }
 0x84a   :  { %1013 = vmatprep.subr.mxu0 %v1851_v19 }
 0x84b   :  { %1014 = vmatpush1.msra.mxu0 %v1855_v20 }
 0x84c   :  { %1015 = vmatprep.subr.mxu0 %v1859_v22 }
 0x84d   :  { %1016 = vmatpush1.msra.mxu0 %v1863_v23 }
 0x84e   :  { %1017 = vmatprep.subr.mxu0 %v1867_v25 }
 0x84f   :  { %1018 = vmatpush1.msra.mxu0 %v1872_v26 }
 0x850   :  { %1019 = vmatprep.subr.mxu0 %v1876_v27 }
 0x851   :  { %1020 = vmatpush1.msra.mxu0 %v1879_v28 }
 0x852   :  { %1021 = vmatprep.subr.mxu0 %v1883_v29 }
 0x853   :  { %1022 = vmatpush1.msra.mxu0 %v1887_v30 }
 0x854   :  { %1023 = vmatprep.subr.mxu0 %v1891_v31 }
 0x855   :  { %1024 = vmatpush1.msra.mxu0 %v1895_v32 }
 0x856   :  { %1025 = vmatprep.subr.mxu0 %v1899_v33 }
 0x857   :  { %1026 = vmatpush1.msra.mxu0 %v1903_v34 }
 0x858   :  { %1467 = vmatprep.subr.mxu0 %v1759_v1 }
 0x908   :  { %v842_v42 = vpop.f32.mrf.mxu0 }
 0x909   :  { %v847_v43 = vadd.f32 %v842_v42, %v1947_v0 }
 0x90a   :  { %v844_v45 = vpop.f32.mrf.mxu0 }
 0x90b   :  { %v1435_v44 = vmul.f32 -1.442695, %v847_v43  ;;  %v848_v46 = vadd.f32 %v844_v45, %v1951_v6 }
 0x90d   :  { %1570 = vpow2.f32 %v1435_v44  ;;  %v1436_v54 = vmul.f32 -1.442695, %v848_v46 }
 0x90e   :  { %1572 = vtanh.f32 %v848_v46 }
 0x91a   :  { %v1571_v47 = vpop.eup %1570 }
 0x91b   :  { %v855_v48 = vadd.f32 1.0, %v1571_v47  ;;  %v1573_v49 = vpop.eup %1572 }
 0x91d   :  { %1574 = vrcp.f32 %v855_v48 }
 0x91e   :  { %1576 = vpow2.f32 %v1436_v54 }
 0x92a   :  { %v1575_v52 = vpop.eup %1574 }
 0x92b   :  { %v866_v13 = vmul.f32 %v1575_v52, %v1573_v49  ;;  %v865_v53 = vmul.f32 %v1575_v52, %v863_v50  ;;  %v1577_v55 = vpop.eup %1576 }
 0x92c   :  { %v856_v24 = vadd.f32 1.0, %v1577_v55 }
 0x92d   :  { %868 = vrot.lane.b32.xlu1 %v866_v13, %s1760_s20 }
 0x92e   :  { %1578 = vrcp.f32 %v856_v24 }
 0x93b   :  { %v1579_v58 = vpop.eup %1578 }
 0x99f   :  { %v869_v56 = vpop.permute.xlu1 %868 }
 0x9a0   :  { %v871_v57 = vadd.f32 %v869_v56, %v865_v53 }
 0x9a2   :  { %1580 = vtanh.f32 %v871_v57 }
 0x9af   :  { %v1581_v59 = vpop.eup %1580 }
 0x9b0   :  { %v873_v60 = vmul.f32 %v1581_v59, %v1579_v58 }
 0x9b2   :  { %881 = vrot.lane.b32.xlu0 %v873_v60, %s1760_s20 }
 0xa24   :  { %v882_v62 = vpop.permute.xlu0 %881 }
 0xa25   :  { %1437 = vmatmul.mubr.msk.f32.vlgmr.msra.gmra.mxu1 %vm324_vm3, %v882_v62 }
 0xa26   :  { %1122 = vmatpush1.msra.mxu1 %v1848_v17  ;;  %1169 = vmatprep.mubr.f32.mxu1 %v1759_v1 }
 0xa27   :  { %1123 = vmatprep.subr.mxu1 %v1851_v19 }
 0xa28   :  { %1124 = vmatpush1.msra.mxu1 %v1855_v20 }
 0xa29   :  { %1125 = vmatprep.subr.mxu1 %v1859_v22 }
 0xa2a   :  { %1126 = vmatpush1.msra.mxu1 %v1863_v23 }
 0xa2b   :  { %1127 = vmatprep.subr.mxu1 %v1867_v25 }
 0xa2c   :  { %1128 = vmatpush1.msra.mxu1 %v1872_v26 }
 0xa2d   :  { %1129 = vmatprep.subr.mxu1 %v1876_v27 }
 0xa2e   :  { %1130 = vmatpush1.msra.mxu1 %v1879_v28 }
 0xa2f   :  { %1131 = vmatprep.subr.mxu1 %v1883_v29 }
 0xa30   :  { %1132 = vmatpush1.msra.mxu1 %v1887_v30  ;;  %v978_v30 = vrot.slane %v871_v57, 6 }
 0xa31   :  { %1133 = vmatprep.subr.mxu1 %v1891_v31 }
 0xa32   :  { %1134 = vmatpush1.msra.mxu1 %v1895_v32 }
 0xa33   :  { %1135 = vmatprep.subr.mxu1 %v1899_v33 }
 0xa34   :  { %1136 = vmatpush1.msra.mxu1 %v1903_v34 }
 0xa35   :  { %1486 = vmatprep.subr.mxu1 %v1759_v1 }
 0xae5   :  { %v951_v17 = vpop.f32.mrf.mxu1 }
 0xae6   :  { %v958_v19 = vrot.slane %v951_v17, 6 }
 0xae7   :  { %v953_v23 = vpop.f32.mrf.mxu1 }
 0xae8   :  { %v962_v20 = vadd.f32 %v958_v19, %v1945_v61  ;;  %v959_v25 = vrot.slane %v953_v23, 6 }
 0xaea   :  { %v1438_v22 = vmul.f32 -1.442695, %v962_v20  ;;  %v963_v26 = vadd.f32 %v959_v25, %v1949_v5 }
 0xaec   :  { %1582 = vpow2.f32 %v1438_v22  ;;  %v1439_v34 = vmul.f32 -1.442695, %v963_v26 }
 0xaed   :  { %1584 = vtanh.f32 %v963_v26 }
 0xaf9   :  { %v1583_v27 = vpop.eup %1582 }
 0xafa   :  { %v970_v28 = vadd.f32 1.0, %v1583_v27  ;;  %v1585_v29 = vpop.eup %1584 }
 0xafc   :  { %1586 = vrcp.f32 %v970_v28 }
 0xafd   :  { %1588 = vpow2.f32 %v1439_v34  ;;  %v1217_v34 = vld [vmem:[#allocation7 + $0x10] sm:$0xff] }
 0xb09   :  { %v1587_v31 = vpop.eup %1586 }
 0xb0a   :  { %v981_v32 = vmul.f32 %v1587_v31, %v1585_v29  ;;  %v980_v33 = vmul.f32 %v1587_v31, %v978_v30  ;;  %v1589_v63 = vpop.eup %1588  ;;  %v1222_v31 = vld [vmem:[#allocation7 + $0x38] sm:$0xff] }
 0xb0b   :  { %v971_v2 = vadd.f32 1.0, %v1589_v63  ;;  %v1216_v63 = vld [vmem:[#allocation7 + $0x8] sm:$0xff] }
 0xb0c   :  { %983 = vrot.lane.b32.xlu1 %v981_v32, %s1760_s20  ;;  %v1221_v32 = vld [vmem:[#allocation7 + $0x30] sm:$0xff] }
 0xb0d   :  { %1590 = vrcp.f32 %v971_v2 }
 0xb1a   :  { %v1591_v7 = vpop.eup %1590 }
 0xb7e   :  { %v984_v3 = vpop.permute.xlu1 %983 }
 0xb7f   :  { %v986_v4 = vadd.f32 %v984_v3, %v980_v33  ;;  %v1218_v33 = vld [vmem:[#allocation7 + $0x18] sm:$0xff] }
 0xb81   :  { %1592 = vtanh.f32 %v986_v4  ;;  %v1088_v49 = vrot.slane %v986_v4, 6 }
 0xb8e   :  { %v1593_v8 = vpop.eup %1592 }
 0xb8f   :  { %v988_v10 = vmul.f32 %v1593_v8, %v1591_v7 }
 0xb91   :  { %v990_v14 = vrot.slane %v988_v10, 2  ;;  %v1215_v10 = vld [vmem:[#allocation7] sm:$0xff] }
 0xb93   :  { %991 = vrot.lane.b32.xlu0 %v990_v14, %s1760_s20 }
 0xc05   :  { %v992_v16 = vpop.permute.xlu0 %991 }
 0xc06   :  { %1440 = vmatmul.mubr.msk.f32.vlgmr.msra.gmra.mxu0 %vm324_vm3, %v992_v16 }
 0xc07   :  { %1468 = vmatpush3.msra.mxu0 %v1230_v15  ;;  %1483 = vmatprep.mubr.msk.f32.mxu0 %vm1761_vm4, %v1759_v1 }
 0xc08   :  { %1469 = vmatprep.subr.mxu0 %v1759_v1 }
 0xc09   :  { %1470 = vmatpush3.msra.mxu0 %v1229_v18 }
 0xc0a   :  { %1471 = vmatprep.subr.mxu0 %v1759_v1 }
 0xc0b   :  { %1472 = vmatpush3.msra.mxu0 %v1228_v21 }
 0xc0c   :  { %1473 = vmatprep.subr.mxu0 %v1759_v1 }
 0xc0d   :  { %1474 = vmatpush3.msra.mxu0 %v1227_v12 }
 0xc0e   :  { %1475 = vmatprep.subr.mxu0 %v1759_v1 }
 0xc0f   :  { %1476 = vmatpush3.msra.mxu0 %v1226_v9 }
 0xc10   :  { %1477 = vmatprep.subr.mxu0 %v1759_v1 }
 0xc11   :  { %1478 = vmatpush3.msra.mxu0 %v1225_v35 }
 0xc12   :  { %1479 = vmatprep.subr.mxu0 %v1759_v1 }
 0xc13   :  { %1480 = vmatpush3.msra.mxu0 %v1224_v36 }
 0xc14   :  { %1481 = vmatprep.subr.mxu0 %v1759_v1 }
 0xc15   :  { %1482 = vmatpush3.msra.mxu0 %v1223_v37 }
 0xc16   :  { %1484 = vmatmul.mubr.msk.f32.vlgmr.msra.gmra.mxu0 %vm324_vm3, %v1965_v51 }
 0xcc6   :  { %v1061_v11 = vpop.f32.mrf.mxu0 }
 0xcc7   :  { %v1068_v38 = vrot.slane %v1061_v11, 4 }
 0xcc8   :  { %v1063_v41 = vpop.f32.mrf.mxu0 }
 0xcc9   :  { %v1072_v39 = vadd.f32 %v1068_v38, %v1947_v0  ;;  %v1069_v42 = vrot.slane %v1063_v41, 4 }
 0xccb   :  { %v1441_v40 = vmul.f32 -1.442695, %v1072_v39  ;;  %v1073_v44 = vadd.f32 %v1069_v42, %v1951_v6 }
 0xccd   :  { %1594 = vpow2.f32 %v1441_v40  ;;  %v1442_v0 = vmul.f32 -1.442695, %v1073_v44 }
 0xcce   :  { %1596 = vtanh.f32 %v1073_v44 }
 0xcd6   :  { %v2091_v43 = vpop.f32.mrf.mxu0 }
 0xcd8   :  { %v1485_v45 = vpop.f32.mrf.mxu0 }
 0xcda   :  { %v1595_v46 = vpop.eup %1594 }
 0xcdb   :  { %v1080_v47 = vadd.f32 1.0, %v1595_v46  ;;  %v1597_v48 = vpop.eup %1596 }
 0xcdd   :  { %1598 = vrcp.f32 %v1080_v47 }
 0xcde   :  { %1600 = vpow2.f32 %v1442_v0 }
 0xcea   :  { %v1599_v51 = vpop.eup %1598 }
 0xceb   :  { %v1091_v50 = vmul.f32 %v1599_v51, %v1597_v48  ;;  %v1090_v52 = vmul.f32 %v1599_v51, %v1088_v49  ;;  %v1601_v13 = vpop.eup %1600 }
 0xcec   :  { %v1081_v53 = vadd.f32 1.0, %v1601_v13 }
 0xced   :  { %1093 = vrot.lane.b32.xlu1 %v1091_v50, %s1760_s20 }
 0xcee   :  { %1602 = vrcp.f32 %v1081_v53 }
 0xcfb   :  { %v1603_v6 = vpop.eup %1602 }
 0xd5f   :  { %v1094_v54 = vpop.permute.xlu1 %1093 }
 0xd60   :  { %v1096_v55 = vadd.f32 %v1094_v54, %v1090_v52 }
 0xd62   :  { %1604 = vtanh.f32 %v1096_v55  ;;  %v1198_v27 = vrot.slane %v1096_v55, 6 }
 0xd6f   :  { %v1605_v24 = vpop.eup %1604 }
 0xd70   :  { %v1098_v56 = vmul.f32 %v1605_v24, %v1603_v6 }
 0xd72   :  { %v1100_v57 = vrot.slane %v1098_v56, 4 }
 0xd74   :  { %1101 = vrot.lane.b32.xlu0 %v1100_v57, %s1760_s20 }
 0xde6   :  { %v1102_v58 = vpop.permute.xlu0 %1101 }
 0xde7   :  { %1443 = vmatmul.mubr.msk.f32.vlgmr.msra.gmra.mxu1 %vm324_vm3, %v1102_v58 }
 0xde8   :  { %1502 = vmatprep.mubr.msk.f32.mxu1 %vm1761_vm4, %v1759_v1  ;;  %1487 = vmatpush3.msra.mxu1 %v1222_v31 }
 0xde9   :  { %1488 = vmatprep.subr.mxu1 %v1759_v1 }
 0xdea   :  { %1489 = vmatpush3.msra.mxu1 %v1221_v32 }
 0xdeb   :  { %1490 = vmatprep.subr.mxu1 %v1759_v1 }
 0xea7   :  { %v1171_v59 = vpop.f32.mrf.mxu1 }
 0xea8   :  { %v1178_v60 = vrot.slane %v1171_v59, 2 }
 0xea9   :  { %v1173_v19 = vpop.f32.mrf.mxu1 }
 0xeaa   :  { %v1182_v62 = vadd.f32 %v1178_v60, %v1945_v61  ;;  %v1179_v20 = vrot.slane %v1173_v19, 2  ;;  %v1220_v61 = vld [vmem:[#allocation7 + $0x28] sm:$0xff] }
 0xeab   :  { %1491 = vmatpush3.msra.mxu1 %v1220_v61 }
 0xeac   :  { %v1444_v17 = vmul.f32 -1.442695, %v1182_v62  ;;  %v1183_v22 = vadd.f32 %v1179_v20, %v1949_v5  ;;  %v1219_v5 = vld [vmem:[#allocation7 + $0x20] sm:$0xff]  ;;  %1492 = vmatprep.subr.mxu1 %v1759_v1 }
 0xead   :  { %1493 = vmatpush3.msra.mxu1 %v1219_v5 }
 0xeae   :  { %1606 = vpow2.f32 %v1444_v17  ;;  %1494 = vmatprep.subr.mxu1 %v1759_v1  ;;  %v1445_v2 = vmul.f32 -1.442695, %v1183_v22 }
 0xeaf   :  { %1608 = vtanh.f32 %v1183_v22  ;;  %1495 = vmatpush3.msra.mxu1 %v1218_v33 }
 0xeb0   :  { %1496 = vmatprep.subr.mxu1 %v1759_v1 }
 0xeb1   :  { %1497 = vmatpush3.msra.mxu1 %v1217_v34 }
 0xeb2   :  { %1498 = vmatprep.subr.mxu1 %v1759_v1 }
 0xeb3   :  { %1499 = vmatpush3.msra.mxu1 %v1216_v63 }
 0xeb4   :  { %1500 = vmatprep.subr.mxu1 %v1759_v1 }
 0xeb5   :  { %1501 = vmatpush3.msra.mxu1 %v1215_v10 }
 0xebb   :  { %v1607_v23 = vpop.eup %1606 }
 0xebc   :  { %v1190_v25 = vadd.f32 1.0, %v1607_v23  ;;  %v1609_v26 = vpop.eup %1608 }
 0xebe   :  { %1610 = vrcp.f32 %v1190_v25 }
 0xebf   :  { %1612 = vpow2.f32 %v1445_v2 }
 0xecb   :  { %v1611_v28 = vpop.eup %1610 }
 0xecc   :  { %v1201_v29 = vmul.f32 %v1611_v28, %v1609_v26  ;;  %v1200_v30 = vmul.f32 %v1611_v28, %v1198_v27  ;;  %v1613_v3 = vpop.eup %1612 }
 0xecd   :  { %v1191_v4 = vadd.f32 1.0, %v1613_v3 }
 0xece   :  { %1203 = vrot.lane.b32.xlu1 %v1201_v29, %s1760_s20 }
 0xecf   :  { %1614 = vrcp.f32 %v1191_v4 }
 0xedc   :  { %v1615_v14 = vpop.eup %1614 }
 0xf40   :  { %v1204_v7 = vpop.permute.xlu1 %1203 }
 0xf41   :  { %v1206_v8 = vadd.f32 %v1204_v7, %v1200_v30 }
 0xf43   :  { %1616 = vtanh.f32 %v1206_v8 }
 0xf50   :  { %v1617_v15 = vpop.eup %1616 }
 0xf51   :  { %v1208_v16 = vmul.f32 %v1617_v15, %v1615_v14 }
 0xf53   :  { %1210 = vrot.lane.b32.xlu1 %v1208_v16, %s1760_s20  ;;  %v1301_v18 = vrot.slane %v1208_v16, 6 }
 0xf55   :  { %1302 = vrot.lane.b32.xlu0 %v1301_v18, %s1760_s20 }
 0xfc5   :  { %v1211_v21 = vpop.permute.xlu1 %1210 }
 0xfc6   :  { %v1213_v1 = vsel %vm324_vm3, %v1211_v21, %v1206_v8 }
 0xfc7   :  { %1214 = vst [vmem:[#allocation11 - $0x6] sm:$0xc0] %v1213_v1  ;;  %v1303_v12 = vpop.permute.xlu0 %1302 }
 0xfc8   :  { %1503 = vmatmul.mubr.msk.f32.vlgmr.msra.gmra.mxu1 %vm324_vm3, %v1303_v12 }
 0xfc9   :  { %1709 = shalt.err (!%p1706_p10)
}
 0xfca   :  { %1404 = dma.vmem_to_hbm [thread:$0]  %s1402_s23, 32, %s2133_s10, [#allocation12]   ;;  %v1448_v35 = vld [vmem:[%s2131_s8] ss:$0 sm:$0xff] }
 0xfcb   :  { %s1763_s3 = smov [#allocation10]  }
 0xfcc   :  { %s1391_s29 = sshll.u32 %s1763_s3, 4  ;;  %s1392_s29 = int_to_ptr.vmem [resolvable:$true] %s1391_s29 }
 0xfcd   :  { %s1718_s30 = scalar_lea.vmem %s1392_s29, 32  ;;  %p1723_p12 = scmp.lt.s32.totalorder %s1392_s29, %s1392_s29 }
 0xfce   :  { %p1719_p11 = scmp.ne.s32.totalorder %s1392_s29, %s1718_s30  ;;  %p1724_p13 = scmp.lt.s32.totalorder %s1718_s30, %s1718_s30 }
 0xfd0   :  { %p1725_p0 = por %p1724_p13, %p1723_p12 }
 0xfd2   :  { %p1726_p1 = pnand %p1725_p0, %p1719_p11 }
0x1088   :  { %v1372_v9 = vpop.f32.mrf.mxu1 }
0x1089   :  { %v1373_v36 = vadd.f32 %v1372_v9, %v2091_v43 }
0x108a   :  { %v1504_v37 = vpop.f32.mrf.mxu1 }
0x108b   :  { %v1383_v11 = vadd.f32 %v1448_v35, %v1373_v36 }
0x108d   :  { %1384 = vst [vmem:[#allocation10] sm:$0x3] %v1383_v11 }
0x108e   :  { %1729 = shalt.err (!%p1726_p1)
}
0x108f   :  { %1394 = dma.vmem_to_hbm [thread:$0]  %s1392_s29, 32, %s2132_s9, [#allocation4]  }
0x1090   :  { %1744 = dma.done.wait [#allocation4], 32  }
0x1091   :  { %1745 = vsyncadd [#allocation4], 4294967264 }
0x1092   :  { %1746 = dma.done.wait [#allocation12], 32  }
0x1093   :  { %1747 = vsyncadd [#allocation12], 4294967264 }
0x1094   :  { %1411 = vsyncpa [#allocation3], 1 }
0x1095   :  { %1412 = vsyncpa [#allocation6], 1 }
0x1096   :  { %1413 = vsyncpa [#allocation9], 1 }
0x1097   :  { %1414 = vsyncpa [#allocation4], 1 }
0x1098   :  { %1415 = vsyncpa [#allocation12], 1 }

</bundles_post_ra>
